<compile_context>
chip_gen: v7x
topology: tpu7x:2x2x1
jax: 0.10.0
libtpu: 0.0.40
codegen_flags: <defaults>
</compile_context>

<pallas_src>
import functools

import jax
import jax.numpy as jnp
from jax import lax
from jax.experimental import pallas as pl
from jax.experimental.pallas import tpu as pltpu


def _round_up(x, m):
    return (x + m - 1) // m * m


# ---------------------------------------------------------------------------
# Kernel 1: fused  h_in = h + vn[batch]   and GIN neighbourhood aggregation
#           z = (1+eps)*h_in + scatter_add_dst( relu(h_in[src] + edge_emb) )
# Edge indices live in SMEM (scalar prefetch); gather/scatter are dynamic
# row accesses on the VMEM-resident node block (no one-hot matmuls).
# ---------------------------------------------------------------------------
def _gin_aggregate_kernel(src_ref, dst_ref, h_ref, vnb_ref, eemb_ref,
                          hin_ref, z_ref, *, num_edges, one_plus_eps):
    h_in = h_ref[...] + vnb_ref[...]
    hin_ref[...] = h_in
    z_ref[...] = one_plus_eps * h_in

    def body(e, carry):
        s = src_ref[e]
        d = dst_ref[e]
        msg = jnp.maximum(hin_ref[pl.ds(s, 1), :] + eemb_ref[pl.ds(e, 1), :],
                          0.0)
        z_ref[pl.ds(d, 1), :] = z_ref[pl.ds(d, 1), :] + msg
        return carry

    lax.fori_loop(0, num_edges, body, 0)


def pallas_gin_aggregate(src, dst, h, vnb, eemb, one_plus_eps):
    Np, Dp = h.shape
    E = eemb.shape[0]
    kernel = functools.partial(_gin_aggregate_kernel, num_edges=E,
                               one_plus_eps=float(one_plus_eps))
    # TODO(synk): for very large N the node block would need edge-tiled
    #             double-buffering; for OGB-code sized graphs [N, Dp] fits VMEM.
    return pl.pallas_call(
        kernel,
        out_shape=(jax.ShapeDtypeStruct((Np, Dp), jnp.float32),
                   jax.ShapeDtypeStruct((Np, Dp), jnp.float32)),
        grid_spec=pltpu.PrefetchScalarGridSpec(
            num_scalar_prefetch=2,
            grid=(1,),
            in_specs=[pl.BlockSpec((Np, Dp), lambda i, s, d: (0, 0)),
                      pl.BlockSpec((Np, Dp), lambda i, s, d: (0, 0)),
                      pl.BlockSpec((E, Dp), lambda i, s, d: (0, 0))],
            out_specs=[pl.BlockSpec((Np, Dp), lambda i, s, d: (0, 0)),
                       pl.BlockSpec((Np, Dp), lambda i, s, d: (0, 0))]),
        compiler_params=pltpu.CompilerParams(
            dimension_semantics=("arbitrary",)),
    )(src, dst, h, vnb, eemb)


# ---------------------------------------------------------------------------
# Kernel 2: fused GIN MLP, row-tiled:
#   out = [relu]( ( relu( (z@W1)*s1 + t1 ) @ W2 )*s2 + t2 )
# (linear biases are folded into the BN shift t; bf16 MXU, f32 epilogue)
# ---------------------------------------------------------------------------
def _gin_mlp_kernel(z_ref, w1_ref, s1_ref, t1_ref, w2_ref, s2_ref, t2_ref,
                    o_ref, *, last_relu):
    x = z_ref[...].astype(jnp.bfloat16)
    y1 = jnp.dot(x, w1_ref[...], preferred_element_type=jnp.float32)
    y1 = jnp.maximum(y1 * s1_ref[...] + t1_ref[...], 0.0)
    y2 = jnp.dot(y1.astype(jnp.bfloat16), w2_ref[...],
                 preferred_element_type=jnp.float32)
    y2 = y2 * s2_ref[...] + t2_ref[...]
    if last_relu:
        y2 = jnp.maximum(y2, 0.0)
    o_ref[...] = y2


def pallas_gin_mlp(z, w1, s1, t1, w2, s2, t2, *, relu_out, tm):
    Np, Dp = z.shape
    Hp = w1.shape[1]
    return pl.pallas_call(
        functools.partial(_gin_mlp_kernel, last_relu=relu_out),
        out_shape=jax.ShapeDtypeStruct((Np, Dp), jnp.float32),
        grid=(Np // tm,),
        in_specs=[pl.BlockSpec((tm, Dp), lambda i: (i, 0)),
                  pl.BlockSpec((Dp, Hp), lambda i: (0, 0)),
                  pl.BlockSpec((1, Hp), lambda i: (0, 0)),
                  pl.BlockSpec((1, Hp), lambda i: (0, 0)),
                  pl.BlockSpec((Hp, Dp), lambda i: (0, 0)),
                  pl.BlockSpec((1, Dp), lambda i: (0, 0)),
                  pl.BlockSpec((1, Dp), lambda i: (0, 0))],
        out_specs=pl.BlockSpec((tm, Dp), lambda i: (i, 0)),
        compiler_params=pltpu.CompilerParams(
            dimension_semantics=("parallel",)),
    )(z, w1, s1, t1, w2, s2, t2)


# ---------------------------------------------------------------------------
# Kernel 3: index-based segment pooling  out[g] = scale[g] * sum_{batch[n]==g} h[n]
# (scale = 1 -> global_add_pool, scale = 1/count -> global_mean_pool)
# ---------------------------------------------------------------------------
def _segment_pool_kernel(batch_ref, h_ref, scale_ref, o_ref, *, num_nodes):
    o_ref[...] = jnp.zeros_like(o_ref)

    def body(n, carry):
        g = batch_ref[n]
        o_ref[pl.ds(g, 1), :] = o_ref[pl.ds(g, 1), :] + h_ref[pl.ds(n, 1), :]
        return carry

    lax.fori_loop(0, num_nodes, body, 0)
    o_ref[...] = o_ref[...] * scale_ref[...]


def pallas_segment_pool(batch_idx, h, scale, num_nodes):
    Np, Dp = h.shape
    Gp = scale.shape[0]
    return pl.pallas_call(
        functools.partial(_segment_pool_kernel, num_nodes=num_nodes),
        out_shape=jax.ShapeDtypeStruct((Gp, Dp), jnp.float32),
        grid_spec=pltpu.PrefetchScalarGridSpec(
            num_scalar_prefetch=1,
            grid=(1,),
            in_specs=[pl.BlockSpec((Np, Dp), lambda i, b: (0, 0)),
                      pl.BlockSpec((Gp, 1), lambda i, b: (0, 0))],
            out_specs=pl.BlockSpec((Gp, Dp), lambda i, b: (0, 0))),
        compiler_params=pltpu.CompilerParams(
            dimension_semantics=("arbitrary",)),
    )(batch_idx, h, scale)


# ---------------------------------------------------------------------------
# Kernel 4: fused virtual-node MLP
#   vn' = relu( ( relu( ((pooled+vn)@W1)*s1 + t1 ) @ W2 )*s2 + t2 )
# ---------------------------------------------------------------------------
def _vn_mlp_kernel(pooled_ref, vn_ref, w1_ref, s1_ref, t1_ref,
                   w2_ref, s2_ref, t2_ref, o_ref):
    x = (pooled_ref[...] + vn_ref[...]).astype(jnp.bfloat16)
    y1 = jnp.dot(x, w1_ref[...], preferred_element_type=jnp.float32)
    y1 = jnp.maximum(y1 * s1_ref[...] + t1_ref[...], 0.0)
    y2 = jnp.dot(y1.astype(jnp.bfloat16), w2_ref[...],
                 preferred_element_type=jnp.float32)
    o_ref[...] = jnp.maximum(y2 * s2_ref[...] + t2_ref[...], 0.0)


def pallas_vn_mlp(pooled, vn, w1, s1, t1, w2, s2, t2):
    Gp, Dp = pooled.shape
    Hp = w1.shape[1]
    return pl.pallas_call(
        _vn_mlp_kernel,
        out_shape=jax.ShapeDtypeStruct((Gp, Dp), jnp.float32),
        grid=(1,),
        in_specs=[pl.BlockSpec((Gp, Dp), lambda i: (0, 0)),
                  pl.BlockSpec((Gp, Dp), lambda i: (0, 0)),
                  pl.BlockSpec((Dp, Hp), lambda i: (0, 0)),
                  pl.BlockSpec((1, Hp), lambda i: (0, 0)),
                  pl.BlockSpec((1, Hp), lambda i: (0, 0)),
                  pl.BlockSpec((Hp, Dp), lambda i: (0, 0)),
                  pl.BlockSpec((1, Dp), lambda i: (0, 0)),
                  pl.BlockSpec((1, Dp), lambda i: (0, 0))],
        out_specs=pl.BlockSpec((Gp, Dp), lambda i: (0, 0)),
    )(pooled, vn, w1, s1, t1, w2, s2, t2)


# ---------------------------------------------------------------------------
# Kernel 5: all prediction heads collapsed into one lane-dense matmul
#   out = h_graph @ W_all + b_all     with W_all : [Dp, L*Vp]
# ---------------------------------------------------------------------------
def _heads_kernel(h_ref, w_ref, b_ref, o_ref):
    y = jnp.dot(h_ref[...].astype(jnp.bfloat16), w_ref[...],
                preferred_element_type=jnp.float32)
    o_ref[...] = y + b_ref[...]


def pallas_pred_heads(h_graph, w_all, b_all):
    Gp, Dp = h_graph.shape
    Wc = w_all.shape[1]
    return pl.pallas_call(
        _heads_kernel,
        out_shape=jax.ShapeDtypeStruct((Gp, Wc), jnp.float32),
        grid=(1,),
        in_specs=[pl.BlockSpec((Gp, Dp), lambda i: (0, 0)),
                  pl.BlockSpec((Dp, Wc), lambda i: (0, 0)),
                  pl.BlockSpec((1, Wc), lambda i: (0, 0))],
        out_specs=pl.BlockSpec((Gp, Wc), lambda i: (0, 0)),
    )(h_graph, w_all, b_all)


# ----------------------------- parameters ----------------------------------

def _bn_fold(bn_params, bias, eps=1e-5):
    # fold eval-mode BatchNorm1d + preceding linear bias into scale/shift
    gamma, beta, rm, rv = bn_params
    scale = gamma / jnp.sqrt(rv + eps)
    shift = beta - rm * scale + bias * scale
    return scale.reshape(1, -1), shift.reshape(1, -1)


def init_params(key, num_layer, emb_dim, num_vocab, max_seq_len,
                num_node_types, num_edge_types):
    Dp = _round_up(emb_dim, 128)            # lane-aligned feature dim
    Hp = _round_up(2 * emb_dim, 128)        # lane-aligned hidden dim
    Vp = _round_up(num_vocab, 128)          # lane-aligned vocab dim

    keys = jax.random.split(key, 512)
    it = iter(range(len(keys)))

    def nk():
        return keys[next(it)]

    def lin(fan_in, fan_out, pad_in, pad_out):
        lim = 1.0 / float(fan_in) ** 0.5
        w = jax.random.uniform(nk(), (fan_in, fan_out), jnp.float32, -lim, lim)
        b = jax.random.uniform(nk(), (fan_out,), jnp.float32, -lim, lim)
        wp = jnp.zeros((pad_in, pad_out), jnp.float32).at[:fan_in, :fan_out].set(w)
        bp = jnp.zeros((pad_out,), jnp.float32).at[:fan_out].set(b)
        return wp.astype(jnp.bfloat16), bp          # bf16 weights, f32 bias

    def bn(cp):   # (gamma, beta, running_mean, running_var) at init (padded = identity)
        return (jnp.ones((cp,), jnp.float32), jnp.zeros((cp,), jnp.float32),
                jnp.zeros((cp,), jnp.float32), jnp.ones((cp,), jnp.float32))

    def emb(rows, dim, dim_p):
        e = 0.1 * jax.random.normal(nk(), (rows, dim), jnp.float32)
        return jnp.zeros((rows, dim_p), jnp.float32).at[:, :dim].set(e)

    params = {'dims': (Dp, Hp, Vp),
              'node_emb': emb(num_node_types, emb_dim, Dp)}

    layers = []
    for l in range(num_layer):
        lp = {'edge_emb': emb(num_edge_types, emb_dim, Dp),
              'eps': 0.0}                                    # GIN eps init = 0
        lp['w1'], lp['b1'] = lin(emb_dim, 2 * emb_dim, Dp, Hp)   # GIN mlp Linear1
        lp['mlp_bn1'] = bn(Hp)                                   # GIN mlp BatchNorm
        lp['w2'], lp['b2'] = lin(2 * emb_dim, emb_dim, Hp, Dp)   # GIN mlp Linear2
        lp['layer_bn'] = bn(Dp)                                  # per-layer BatchNorm
        if l < num_layer - 1:                                    # virtual-node MLP
            vp = {}
            vp['w1'], vp['b1'] = lin(emb_dim, 2 * emb_dim, Dp, Hp)
            vp['bn1'] = bn(Hp)
            vp['w2'], vp['b2'] = lin(2 * emb_dim, emb_dim, Hp, Dp)
            vp['bn2'] = bn(Dp)
            lp['vn_mlp'] = vp
        layers.append(lp)
    params['layers'] = layers

    # collapsed prediction heads: [Dp, max_seq_len * Vp]
    w_all = jnp.zeros((Dp, max_seq_len * Vp), jnp.float32)
    b_all = jnp.zeros((1, max_seq_len * Vp), jnp.float32)
    lim = 1.0 / float(emb_dim) ** 0.5
    for l in range(max_seq_len):
        w = jax.random.uniform(nk(), (emb_dim, num_vocab), jnp.float32, -lim, lim)
        b = jax.random.uniform(nk(), (num_vocab,), jnp.float32, -lim, lim)
        w_all = w_all.at[:emb_dim, l * Vp:l * Vp + num_vocab].set(w)
        b_all = b_all.at[0, l * Vp:l * Vp + num_vocab].set(b)
    params['head_w'] = w_all.astype(jnp.bfloat16)
    params['head_b'] = b_all
    return params


# ------------------------------ forward ------------------------------------

def gnn_forward(params, node_type, edge_index, edge_type, batch, num_graphs,
                num_layer, emb_dim, num_vocab, max_seq_len):
    Dp, Hp, Vp = params['dims']
    N = node_type.shape[0]
    G = num_graphs
    Gp = _round_up(G, 8)

    # row tile for the fused GIN MLP; node rows padded to a tile multiple
    TM = min(512, _round_up(N, 8))
    Np = _round_up(N, TM)

    src = edge_index[0].astype(jnp.int32)
    dst = edge_index[1].astype(jnp.int32)
    batch32 = batch.astype(jnp.int32)

    def pad_rows(x, rows):
        return jnp.zeros((rows, x.shape[1]), x.dtype).at[:x.shape[0], :].set(x)

    # glue: embedding-table gather (index lookup, no FLOPs)
    h = pad_rows(params['node_emb'][node_type], Np)                 # [Np, Dp]

    # eval-mode mean-pool 1/count per graph
    counts = jnp.zeros((Gp,), jnp.float32).at[batch32].add(1.0)
    inv_counts = (1.0 / jnp.maximum(counts, 1.0)).reshape(Gp, 1)
    ones_g = jnp.ones((Gp, 1), jnp.float32)

    vn = jnp.zeros((Gp, Dp), jnp.float32)    # nn.Embedding(1, D) init to zeros

    for l in range(num_layer):
        lp = params['layers'][l]

        # virtual-node broadcast = row gather vn[batch] (glue); add fused in-kernel
        vnb = pad_rows(jnp.take(vn, batch32, axis=0), Np)           # [Np, Dp]
        eemb = jnp.take(lp['edge_emb'], edge_type, axis=0)          # [E, Dp]

        # fused: h_in = h + vn[batch];  z = (1+eps)*h_in + scatter_add(relu(h_in[src]+eemb))
        h_in, z = pallas_gin_aggregate(src, dst, h, vnb, eemb, 1.0 + lp['eps'])

        # fused GIN MLP: Linear1+BN+ReLU -> Linear2 + layer-BN (+ReLU unless last)
        s1, t1 = _bn_fold(lp['mlp_bn1'], lp['b1'])
        s2, t2 = _bn_fold(lp['layer_bn'], lp['b2'])
        h_next = pallas_gin_mlp(z, lp['w1'], s1, t1, lp['w2'], s2, t2,
                                relu_out=(l < num_layer - 1), tm=TM)
        # residual=False (default); dropout = identity (eval)

        # virtual-node update (uses pre-conv h_in, as in the OGB reference)
        if l < num_layer - 1:
            vp = lp['vn_mlp']
            pooled = pallas_segment_pool(batch32, h_in, ones_g, N)  # add-pool [Gp, Dp]
            sv1, tv1 = _bn_fold(vp['bn1'], vp['b1'])
            sv2, tv2 = _bn_fold(vp['bn2'], vp['b2'])
            vn = pallas_vn_mlp(pooled, vn, vp['w1'], sv1, tv1,
                               vp['w2'], sv2, tv2)

        h = h_next

    # JK == 'last';  graph_pooling == 'mean'
    h_graph = pallas_segment_pool(batch32, h, inv_counts, N)        # [Gp, Dp]

    # all max_seq_len heads in one lane-dense matmul, split afterwards
    out = pallas_pred_heads(h_graph, params['head_w'], params['head_b'])
    return [out[:G, l * Vp:l * Vp + num_vocab] for l in range(max_seq_len)]


# ------------------------------- main ---------------------------------------

if __name__ == "__main__":
    NUM_NODES, NUM_EDGES, NUM_GRAPHS = 64, 128, 4
    EMB_DIM, NUM_VOCAB, MAX_SEQ_LEN = 128, 16, 4
    NUM_LAYER = 3
    NUM_NODE_TYPES, NUM_EDGE_TYPES = 8, 4

    key = jax.random.PRNGKey(0)
    kp, k1, k2, k3 = jax.random.split(key, 4)

    params = init_params(kp, NUM_LAYER, EMB_DIM, NUM_VOCAB, MAX_SEQ_LEN,
                         NUM_NODE_TYPES, NUM_EDGE_TYPES)

    node_type = jax.random.randint(k1, (NUM_NODES,), 0, NUM_NODE_TYPES)
    edge_index = jax.random.randint(k2, (2, NUM_EDGES), 0, NUM_NODES)
    edge_type = jax.random.randint(k3, (NUM_EDGES,), 0, NUM_EDGE_TYPES)
    batch = jnp.repeat(jnp.arange(NUM_GRAPHS, dtype=jnp.int32),
                       NUM_NODES // NUM_GRAPHS)

    pred_list = gnn_forward(params, node_type, edge_index, edge_type, batch,
                            NUM_GRAPHS, NUM_LAYER, EMB_DIM, NUM_VOCAB,
                            MAX_SEQ_LEN)
    pred_list = jax.block_until_ready(pred_list)

    assert len(pred_list) == MAX_SEQ_LEN
    assert pred_list[0].shape == (NUM_GRAPHS, NUM_VOCAB)
    assert all(bool(jnp.isfinite(p).all()) for p in pred_list)
    print("KERNEL_OK")
</pallas_src>

<mosaic_0001>
module attributes {stable_mosaic.version = 11 : i64} {
  func.func @_gin_aggregate_kernel(%arg0: i32, %arg1: memref<128xi32, #tpu.memory_space<smem>>, %arg2: memref<128xi32, #tpu.memory_space<smem>>, %arg3: memref<64x128xf32, #tpu.memory_space<vmem>>, %arg4: memref<64x128xf32, #tpu.memory_space<vmem>>, %arg5: memref<128x128xf32, #tpu.memory_space<vmem>>, %arg6: memref<64x128xf32, #tpu.memory_space<vmem>>, %arg7: memref<64x128xf32, #tpu.memory_space<vmem>>) attributes {dimension_semantics = [#tpu.dimension_semantics<arbitrary>], iteration_bounds = array<i64: 1>, scalar_prefetch = 2 : i64, scratch_operands = 0 : i64, tpu.core_type = #tpu.core_type<tc>, window_params = [{pipeline_mode = #tpu.pipeline_mode<synchronous>, transform_indices = @transform_0, window_bounds = array<i64: 64, 128>}, {pipeline_mode = #tpu.pipeline_mode<synchronous>, transform_indices = @transform_1, window_bounds = array<i64: 64, 128>}, {pipeline_mode = #tpu.pipeline_mode<synchronous>, transform_indices = @transform_2, window_bounds = array<i64: 128, 128>}, {pipeline_mode = #tpu.pipeline_mode<synchronous>, transform_indices = @transform_3, window_bounds = array<i64: 64, 128>}, {pipeline_mode = #tpu.pipeline_mode<synchronous>, transform_indices = @transform_4, window_bounds = array<i64: 64, 128>}]} {
    %c0 = arith.constant 0 : index
    %c0_0 = arith.constant 0 : index
    %0 = vector.load %arg3[%c0, %c0_0] : memref<64x128xf32, #tpu.memory_space<vmem>>, vector<64x128xf32>
    %c0_1 = arith.constant 0 : index
    %c0_2 = arith.constant 0 : index
    %1 = vector.load %arg4[%c0_1, %c0_2] : memref<64x128xf32, #tpu.memory_space<vmem>>, vector<64x128xf32>
    %2 = arith.addf %0, %1 : vector<64x128xf32>
    %c0_3 = arith.constant 0 : index
    %c0_4 = arith.constant 0 : index
    %3 = vector.load %arg6[%c0_3, %c0_4] : memref<64x128xf32, #tpu.memory_space<vmem>>, vector<64x128xf32>
    tpu.vector_store %arg6[%c0_3, %c0_4], %2 {strides = array<i32>} : memref<64x128xf32, #tpu.memory_space<vmem>>, vector<64x128xf32>,
    %cst = arith.constant 1.000000e+00 : f32
    %4 = vector.broadcast %cst : f32 to vector<64x128xf32>
    %5 = arith.mulf %4, %2 : vector<64x128xf32>
    %c0_5 = arith.constant 0 : index
    %c0_6 = arith.constant 0 : index
    %6 = vector.load %arg7[%c0_5, %c0_6] : memref<64x128xf32, #tpu.memory_space<vmem>>, vector<64x128xf32>
    tpu.vector_store %arg7[%c0_5, %c0_6], %5 {strides = array<i32>} : memref<64x128xf32, #tpu.memory_space<vmem>>, vector<64x128xf32>,
    %c0_i32 = arith.constant 0 : i32
    %c128_i32 = arith.constant 128 : i32
    %7 = arith.addi %c0_i32, %c128_i32 : i32
    %c1_i32 = arith.constant 1 : i32
    scf.for %arg8 = %c0_i32 to %7 step %c1_i32  : i32 {
      %8 = arith.index_cast %arg8 : i32 to index
      %9 = memref.load %arg1[%8] : memref<128xi32, #tpu.memory_space<smem>>
      %10 = arith.index_cast %arg8 : i32 to index
      %11 = memref.load %arg2[%10] : memref<128xi32, #tpu.memory_space<smem>>
      %12 = arith.index_cast %9 : i32 to index
      %c0_8 = arith.constant 0 : index
      %13 = vector.load %arg6[%12, %c0_8] : memref<64x128xf32, #tpu.memory_space<vmem>>, vector<1x128xf32>
      %14 = arith.index_cast %arg8 : i32 to index
      %c0_9 = arith.constant 0 : index
      %15 = vector.load %arg5[%14, %c0_9] : memref<128x128xf32, #tpu.memory_space<vmem>>, vector<1x128xf32>
      %16 = arith.addf %13, %15 : vector<1x128xf32>
      %cst_10 = arith.constant 0.000000e+00 : f32
      %17 = vector.broadcast %cst_10 : f32 to vector<1x128xf32>
      %18 = arith.maximumf %16, %17 : vector<1x128xf32>
      %19 = arith.index_cast %11 : i32 to index
      %c0_11 = arith.constant 0 : index
      %20 = vector.load %arg7[%19, %c0_11] : memref<64x128xf32, #tpu.memory_space<vmem>>, vector<1x128xf32>
      %21 = arith.addf %20, %18 : vector<1x128xf32>
      %22 = arith.index_cast %11 : i32 to index
      %c0_12 = arith.constant 0 : index
      %23 = vector.load %arg7[%22, %c0_12] : memref<64x128xf32, #tpu.memory_space<vmem>>, vector<1x128xf32>
      tpu.vector_store %arg7[%22, %c0_12], %21 {strides = array<i32>} : memref<64x128xf32, #tpu.memory_space<vmem>>, vector<1x128xf32>,
    }
    %c128_i32_7 = arith.constant 128 : i32
    return
  }
  func.func @transform_0(%arg0: i32, %arg1: memref<128xi32, #tpu.memory_space<smem>>, %arg2: memref<128xi32, #tpu.memory_space<smem>>) -> (i32, i32) {
    %c0_i32 = arith.constant 0 : i32
    %c0_i32_0 = arith.constant 0 : i32
    %c0_i32_1 = arith.constant 0 : i32
    return %c0_i32, %c0_i32_0 : i32, i32
  }
  func.func @transform_1(%arg0: i32, %arg1: memref<128xi32, #tpu.memory_space<smem>>, %arg2: memref<128xi32, #tpu.memory_space<smem>>) -> (i32, i32) {
    %c0_i32 = arith.constant 0 : i32
    %c0_i32_0 = arith.constant 0 : i32
    %c0_i32_1 = arith.constant 0 : i32
    return %c0_i32, %c0_i32_0 : i32, i32
  }
  func.func @transform_2(%arg0: i32, %arg1: memref<128xi32, #tpu.memory_space<smem>>, %arg2: memref<128xi32, #tpu.memory_space<smem>>) -> (i32, i32) {
    %c0_i32 = arith.constant 0 : i32
    %c0_i32_0 = arith.constant 0 : i32
    %c0_i32_1 = arith.constant 0 : i32
    return %c0_i32, %c0_i32_0 : i32, i32
  }
  func.func @transform_3(%arg0: i32, %arg1: memref<128xi32, #tpu.memory_space<smem>>, %arg2: memref<128xi32, #tpu.memory_space<smem>>) -> (i32, i32) {
    %c0_i32 = arith.constant 0 : i32
    %c0_i32_0 = arith.constant 0 : i32
    %c0_i32_1 = arith.constant 0 : i32
    return %c0_i32, %c0_i32_0 : i32, i32
  }
  func.func @transform_4(%arg0: i32, %arg1: memref<128xi32, #tpu.memory_space<smem>>, %arg2: memref<128xi32, #tpu.memory_space<smem>>) -> (i32, i32) {
    %c0_i32 = arith.constant 0 : i32
    %c0_i32_0 = arith.constant 0 : i32
    %c0_i32_1 = arith.constant 0 : i32
    return %c0_i32, %c0_i32_0 : i32, i32
  }
}

</mosaic_0001>

<bundles_post_ra>
// kernel: tpu_custom_call.1
= control target key start
LH: loop header
LB: loop body
LE: loop exit
PB: predicated region body
PF: predicated region fallthrough
CT: control target
= control target key end

     0   :  { %s484_s0 = inlined_call_operand.hbm [shape: s32[128], index: 0, kind: input, shape index: {}]   ;;  %s485_s2 = inlined_call_operand.hbm [shape: f32[64,128], index: 2, kind: input, shape index: {}]   ;;  %s486_s3 = inlined_call_operand.hbm [shape: f32[64,128], index: 3, kind: input, shape index: {}]   ;;  %s487_s4 = inlined_call_operand.hbm [shape: f32[128,128], index: 4, kind: input, shape index: {}]   ;;  %s488_s5 = inlined_call_operand.hbm [shape: f32[64,128], index: 5, kind: output, shape index: {0}]   ;;  %s489_s6 = inlined_call_operand.hbm [shape: f32[64,128], index: 6, kind: output, shape index: {1}]   ;;  %s490_s1 = inlined_call_operand.vmem [shape: s32[128], index: 1, kind: input, shape index: {}]  }
   0x1   :  { %s186_s23 = scalar_lea.hbm %s484_s0, 16 }
   0x2   :  { %p187_p0 = scmp.ne.s32.totalorder %s484_s0, %s186_s23  ;;  %p190_p1 = scmp.lt.u32.totalorder %s186_s23, %s484_s0 }
   0x4   :  { %p192_p2 = pnand %p190_p1, %p187_p0 }
   0x6   :  { %195 = shalt.err (!%p192_p2)  }
   0x7   :  { %s336_s28 = smov [#allocation3]   ;;  %s14_s9 = sshll.u32 %s490_s1, 4  ;;  %s15_s9 = int_to_ptr.vmem [resolvable:$true] %s14_s9 }
   0x8   :  { %13 = dma.hbm_to_smem %s484_s0, 16, %s336_s28, [#allocation2] }
   0x9   :  { %s196_s10 = scalar_lea.vmem %s15_s9, 16  ;;  %p201_p4 = scmp.lt.s32.totalorder %s15_s9, %s15_s9 }
   0xa   :  { %p197_p3 = scmp.ne.s32.totalorder %s15_s9, %s196_s10  ;;  %p202_p5 = scmp.lt.s32.totalorder %s196_s10, %s196_s10 }
   0xc   :  { %p203_p6 = por %p202_p5, %p201_p4 }
   0xe   :  { %p204_p7 = pnand %p203_p6, %p197_p3 }
  0x10   :  { %207 = shalt.err (!%p204_p7)  }
  0x11   :  { %s337_s11 = smov [#allocation4]  }
  0x12   :  { %17 = dma.vmem_to_smem %s15_s9, 16, %s337_s11, [#allocation2] }
  0x13   :  { %322 = dma.done.wait [#allocation2], 32 }
  0x14   :  { %323 = vsyncadd [#allocation2], 4294967264 }
  0x15   :  { %19 = sfence }
  0x16   :  { %20 = vsyncpa [#allocation6], 0 }
  0x17   :  { %21 = vsyncpa [#allocation9], 0 }
  0x18   :  { %22 = vsyncpa [#allocation7], 0 }
  0x19   :  { %23 = vsyncpa [#allocation13], 0  ;;  %s338_s0 = smov [#allocation8]   ;;  %s339_s1 = smov [#allocation5]  }
  0x1a   :  { %s41_s12 = sshll.u32 %s338_s0, 4  ;;  %s29_s13 = sshll.u32 %s339_s1, 4  ;;  %s42_s12 = int_to_ptr.vmem [resolvable:$true] %s41_s12  ;;  %s395_s13 = int_to_ptr.vmem [resolvable:$true] %s29_s13 }
  0x1b   :  { %s208_s16 = scalar_lea.hbm %s486_s3, 1024 }
  0x1c   :  { %p209_p8 = scmp.ne.s32.totalorder %s486_s3, %s208_s16  ;;  %p212_p9 = scmp.lt.u32.totalorder %s208_s16, %s486_s3 }
  0x1e   :  { %p214_p10 = pnand %p212_p9, %p209_p8 }
  0x20   :  { %217 = shalt.err (!%p214_p10)
}
  0x21   :  { %s218_s21 = scalar_lea.vmem %s42_s12, 1024  ;;  %p223_p12 = scmp.lt.s32.totalorder %s42_s12, %s42_s12 }
  0x22   :  { %p219_p11 = scmp.ne.s32.totalorder %s42_s12, %s218_s21  ;;  %p224_p13 = scmp.lt.s32.totalorder %s218_s21, %s218_s21 }
  0x24   :  { %p225_p0 = por %p224_p13, %p223_p12 }
  0x26   :  { %p226_p1 = pnand %p225_p0, %p219_p11 }
  0x28   :  { %229 = shalt.err (!%p226_p1)
}
  0x29   :  { %s340_s22 = smov 128   ;;  %s341_s23 = smov 8  }
  0x2a   :  { %47 = dma.hbm_to_vmem [thread:$0]  %s486_s3, 1024, %s42_s12, [#allocation9], %s340_s22, %s340_s22, %s341_s23  }
  0x2b   :  { %s230_s28 = scalar_lea.hbm %s485_s2, 1024 }
  0x2c   :  { %p231_p2 = scmp.ne.s32.totalorder %s485_s2, %s230_s28  ;;  %p234_p3 = scmp.lt.u32.totalorder %s230_s28, %s485_s2 }
  0x2e   :  { %p236_p4 = pnand %p234_p3, %p231_p2 }
  0x30   :  { %239 = shalt.err (!%p236_p4)
}
  0x31   :  { %s240_s9 = scalar_lea.vmem %s395_s13, 1024  ;;  %p245_p6 = scmp.lt.s32.totalorder %s395_s13, %s395_s13 }
  0x32   :  { %p241_p5 = scmp.ne.s32.totalorder %s395_s13, %s240_s9  ;;  %p246_p7 = scmp.lt.s32.totalorder %s240_s9, %s240_s9 }
  0x34   :  { %p247_p8 = por %p246_p7, %p245_p6 }
  0x36   :  { %p248_p9 = pnand %p247_p8, %p241_p5 }
  0x38   :  { %251 = shalt.err (!%p248_p9)
}
  0x39   :  { %35 = dma.hbm_to_vmem [thread:$0]  %s485_s2, 1024, %s395_s13, [#allocation6], %s340_s22, %s340_s22, %s341_s23  }
  0x3a   :  { %s342_s11 = smov [#allocation10]   ;;  %s252_s14 = scalar_lea.hbm %s487_s4, 2048 }
  0x3b   :  { %s53_s0 = sshll.u32 %s342_s11, 4  ;;  %p253_p10 = scmp.ne.s32.totalorder %s487_s4, %s252_s14  ;;  %s54_s0 = int_to_ptr.vmem [resolvable:$true] %s53_s0 }
  0x3c   :  { %p256_p11 = scmp.lt.u32.totalorder %s252_s14, %s487_s4 }
  0x3e   :  { %p258_p12 = pnand %p256_p11, %p253_p10 }
  0x40   :  { %261 = shalt.err (!%p258_p12)
}
  0x41   :  { %s262_s19 = scalar_lea.vmem %s54_s0, 2048  ;;  %p267_p0 = scmp.lt.s32.totalorder %s54_s0, %s54_s0 }
  0x42   :  { %p263_p13 = scmp.ne.s32.totalorder %s54_s0, %s262_s19  ;;  %p268_p1 = scmp.lt.s32.totalorder %s262_s19, %s262_s19 }
  0x44   :  { %p269_p2 = por %p268_p1, %p267_p0 }
  0x46   :  { %p270_p3 = pnand %p269_p2, %p263_p13 }
  0x48   :  { %273 = shalt.err (!%p270_p3)
}
  0x49   :  { %59 = dma.hbm_to_vmem [thread:$0]  %s487_s4, 2048, %s54_s0, [#allocation9], %s340_s22, %s340_s22, %s341_s23  }
  0x4a   :  { %324 = dma.done.wait [#allocation6], 1024  }
  0x4b   :  { %325 = vsyncadd [#allocation6], 4294966272 }
  0x4c   :  { %326 = dma.done.wait [#allocation9], 3072  }
  0x4d   :  { %327 = vsyncadd [#allocation9], 4294964224  ;;  %v69_v0 = vld [vmem:[#allocation5] sm:$0xff]  ;;  %v70_v2 = vld [vmem:[#allocation5 + $0x8] sm:$0xff]  ;;  %s332_s4 = smov 0  }
  0x4e   :  { %v77_v1 = vld [vmem:[#allocation8] sm:$0xff]  ;;  %v78_v4 = vld [vmem:[#allocation8 + $0x8] sm:$0xff]  ;;  %v71_v5 = vld [vmem:[#allocation5 + $0x10] sm:$0xff] }
  0x4f   :  { %v85_v3 = vadd.f32 %v77_v1, %v69_v0  ;;  %v79_v6 = vld [vmem:[#allocation8 + $0x10] sm:$0xff]  ;;  %v86_v7 = vadd.f32 %v78_v4, %v70_v2  ;;  %v72_v9 = vld [vmem:[#allocation5 + $0x18] sm:$0xff]  ;;  %v73_v11 = vld [vmem:[#allocation5 + $0x20] sm:$0xff] }
  0x50   :  { %v87_v8 = vadd.f32 %v79_v6, %v71_v5  ;;  %v80_v10 = vld [vmem:[#allocation8 + $0x18] sm:$0xff]  ;;  %v81_v13 = vld [vmem:[#allocation8 + $0x20] sm:$0xff]  ;;  %v74_v14 = vld [vmem:[#allocation5 + $0x28] sm:$0xff] }
  0x51   :  { %93 = vst [vmem:[#allocation11] sm:$0xff] %v85_v3  ;;  %101 = vst [vmem:[#allocation12] sm:$0xff] %v85_v3  ;;  %v88_v12 = vadd.f32 %v80_v10, %v72_v9  ;;  %v82_v15 = vld [vmem:[#allocation8 + $0x28] sm:$0xff]  ;;  %v89_v16 = vadd.f32 %v81_v13, %v73_v11  ;;  %v75_v18 = vld [vmem:[#allocation5 + $0x30] sm:$0xff] }
  0x52   :  { %94 = vst [vmem:[#allocation11 + $0x8] sm:$0xff] %v86_v7  ;;  %102 = vst [vmem:[#allocation12 + $0x8] sm:$0xff] %v86_v7  ;;  %v90_v17 = vadd.f32 %v82_v15, %v74_v14  ;;  %v83_v19 = vld [vmem:[#allocation8 + $0x30] sm:$0xff]  ;;  %v76_v20 = vld [vmem:[#allocation5 + $0x38] sm:$0xff] }
  0x53   :  { %95 = vst [vmem:[#allocation11 + $0x10] sm:$0xff] %v87_v8  ;;  %103 = vst [vmem:[#allocation12 + $0x10] sm:$0xff] %v87_v8  ;;  %v91_v21 = vadd.f32 %v83_v19, %v75_v18  ;;  %v84_v22 = vld [vmem:[#allocation8 + $0x38] sm:$0xff] }
  0x54   :  { %96 = vst [vmem:[#allocation11 + $0x18] sm:$0xff] %v88_v12  ;;  %104 = vst [vmem:[#allocation12 + $0x18] sm:$0xff] %v88_v12  ;;  %v92_v23 = vadd.f32 %v84_v22, %v76_v20 }
  0x55   :  { %97 = vst [vmem:[#allocation11 + $0x20] sm:$0xff] %v89_v16  ;;  %105 = vst [vmem:[#allocation12 + $0x20] sm:$0xff] %v89_v16 }
  0x56   :  { %98 = vst [vmem:[#allocation11 + $0x28] sm:$0xff] %v90_v17  ;;  %106 = vst [vmem:[#allocation12 + $0x28] sm:$0xff] %v90_v17 }
  0x57   :  { %99 = vst [vmem:[#allocation11 + $0x30] sm:$0xff] %v91_v21  ;;  %107 = vst [vmem:[#allocation12 + $0x30] sm:$0xff] %v91_v21 }
  0x58   :  { %100 = vst [vmem:[#allocation11 + $0x38] sm:$0xff] %v92_v23  ;;  %108 = vst [vmem:[#allocation12 + $0x38] sm:$0xff] %v92_v23 }
  0x59 LB: > { %s115_s20 = sld [smem:[#allocation3 + %s334_s4]]  ;;  %s119_s24 = scalar_lea.vmem [#allocation10], %s334_s4  ;;  %s334_s4 = sphi %s332_s4, %s114_s4  }
  0x5a   : > { %s116_s21 = sld [smem:[#allocation4 + %s334_s4]]  ;;  %v120_v24 = vld [vmem:[%s119_s24] sm:$0x1]  ;;  %s114_s4 = sadd.s32 1, %s334_s4  }
  0x5b   : > { %p111_p4 = scmp.ge.s32.totalorder %s114_s4, 128  }
  0x5c   :  { %s343_s27 = smov (%p111_p4), [#allocation11]   ;;  %s344_s29 = smov (%p111_p4), [#allocation12]  }
  0x5d   :  { %s132_s28 = sshll.u32 (%p111_p4), %s343_s27, 4  ;;  %s144_s30 = sshll.u32 (%p111_p4), %s344_s29, 4  ;;  %s133_s28 = int_to_ptr.vmem [resolvable:$true] %s132_s28  ;;  %s447_s30 = int_to_ptr.vmem [resolvable:$true] %s144_s30 }
  0x5e   :  { %s274_s7 = scalar_lea.vmem (%p111_p4), %s133_s28, 1024  ;;  %p279_p6 = scmp.lt.s32.totalorder (%p111_p4), %s133_s28, %s133_s28 }
  0x5f   : > { %s117_s25 = scalar_lea.vmem [#allocation11], %s115_s20  ;;  %p275_p5 = scmp.ne.s32.totalorder (%p111_p4), %s133_s28, %s274_s7 }
  0x60   : > { %v118_v25 = vld [vmem:[%s117_s25] sm:$0x1]  ;;  %s123_s26 = scalar_lea.vmem [#allocation12], %s116_s21  ;;  %p280_p7 = scmp.lt.s32.totalorder (%p111_p4), %s274_s7, %s274_s7 }
  0x61   : > { %v121_v26 = vadd.f32 %v120_v24, %v118_v25  ;;  %v124_v27 = vld [vmem:[%s123_s26] sm:$0x1]  ;;  %113 = sbr.rel (!%p111_p4) target bundleno = 89 (0x59), region = 62 }
  0x62   :  { %p281_p8 = por (%p111_p4), %p280_p7, %p279_p6 }
  0x63   : > { %v122_v28 = vmax.f32 %v121_v26, 0.0 }
  0x64   :  { %p282_p9 = pnand (%p111_p4), %p281_p8, %p275_p5 }
  0x65   : > { %v125_v29 = vadd.f32 %v124_v27, %v122_v28 }
  0x67   : > { %126 = vst [vmem:[%s123_s26] sm:$0x1] %v125_v29 }
  0x68   :  { %285 = shalt.err (!%p282_p9)
}
  0x69   :  { %s286_s3 = scalar_lea.hbm %s488_s5, 1024 }
  0x6a   :  { %p287_p10 = scmp.ne.s32.totalorder %s488_s5, %s286_s3  ;;  %p290_p11 = scmp.lt.u32.totalorder %s286_s3, %s488_s5 }
  0x6c   :  { %p292_p12 = pnand %p290_p11, %p287_p10 }
  0x6e   :  { %295 = shalt.err (!%p292_p12)
}
  0x6f   :  { %138 = dma.vmem_to_hbm [thread:$0]  %s133_s28, 1024, %s488_s5, [#allocation7], %s340_s22, %s340_s22, %s341_s23  }
  0x70   :  { %s296_s15 = scalar_lea.vmem %s447_s30, 1024  ;;  %p301_p0 = scmp.lt.s32.totalorder %s447_s30, %s447_s30 }
  0x71   :  { %p297_p13 = scmp.ne.s32.totalorder %s447_s30, %s296_s15  ;;  %p302_p1 = scmp.lt.s32.totalorder %s296_s15, %s296_s15 }
  0x73   :  { %p303_p2 = por %p302_p1, %p301_p0 }
  0x75   :  { %p304_p3 = pnand %p303_p2, %p297_p13 }
  0x77   :  { %307 = shalt.err (!%p304_p3)
}
  0x78   :  { %s308_s18 = scalar_lea.hbm %s489_s6, 1024 }
  0x79   :  { %p309_p4 = scmp.ne.s32.totalorder %s489_s6, %s308_s18  ;;  %p312_p5 = scmp.lt.u32.totalorder %s308_s18, %s489_s6 }
  0x7b   :  { %p314_p6 = pnand %p312_p5, %p309_p4 }
  0x7d   :  { %317 = shalt.err (!%p314_p6)
}
  0x7e   :  { %150 = dma.vmem_to_hbm [thread:$0]  %s447_s30, 1024, %s489_s6, [#allocation13], %s340_s22, %s340_s22, %s341_s23  }
  0x7f   :  { %328 = dma.done.wait [#allocation7], 1024  }
  0x80   :  { %329 = vsyncadd [#allocation7], 4294966272 }
  0x81   :  { %330 = dma.done.wait [#allocation13], 1024  }
  0x82   :  { %331 = vsyncadd [#allocation13], 4294966272 }
  0x83   :  { %157 = vsyncpa [#allocation6], 1 }
  0x84   :  { %158 = vsyncpa [#allocation9], 1 }
  0x85   :  { %159 = vsyncpa [#allocation7], 1 }
  0x86   :  { %160 = vsyncpa [#allocation13], 1 }

</bundles_post_ra>
